<compile_context>
chip_gen: v7x
topology: tpu7x:2x2x1
jax: 0.10.0
libtpu: 0.0.40
codegen_flags: <defaults>
</compile_context>

<pallas_src>
import jax
import jax.numpy as jnp
from jax import lax
from jax.experimental import pallas as pl
from jax.experimental.pallas import tpu as pltpu


def _dual_conv_upsample_kernel(x_ref, b1t_ref, rt_ref, a2t_ref, st_ref,
                               b1_ref, b2_ref, o_ref):
    # x_ref:   (1, W, Cin*H)        bf16  transposed input (one image)
    # b1t_ref: (Cin*H, 3*C)         bf16  conv1 dy+pad+channel-mix, dx-concat (C = Cout*H2)
    # rt_ref:  (3, W2, W)           f32   nearest-x2 W-upsample + dx shift + pad
    # a2t_ref: (C, 3*C)             bf16  conv2 dy+pad+channel-mix, dx-concat
    # st_ref:  (3, W2, W2)          f32   conv2 dx shift + pad
    # b1/b2:   (1, C)               f32
    # o_ref:   (1, W2, C)           lane-dense output (wrapper transposes to NCHW)
    f32 = jnp.float32
    c = a2t_ref.shape[0]                       # C = Cout*H2

    xt = x_ref[0]                              # (W, Cin*H) bf16

    # ---- conv1: one wide matmul (dy + channel mix, dx concatenated on lanes),
    #      then three lane-aligned blocks contracted with upsample+shift ops ----
    g = jnp.dot(xt, b1t_ref[...], preferred_element_type=f32)        # (W, 3C) f32
    y = jnp.dot(rt_ref[0], g[:, 0:c],       preferred_element_type=f32)
    y = y + jnp.dot(rt_ref[1], g[:, c:2 * c],   preferred_element_type=f32)
    y = y + jnp.dot(rt_ref[2], g[:, 2 * c:3 * c], preferred_element_type=f32)
    y = y + b1_ref[...]                                              # (1, C) bcast
    y = jnp.where(y >= 0, y, 0.2 * y)                                # LeakyReLU(0.2)
    yb = y.astype(jnp.bfloat16)

    # ---- conv2: one wide matmul (K = C = 256), then three shift contractions ----
    t = jnp.dot(yb, a2t_ref[...], preferred_element_type=f32)        # (W2, 3C) f32
    z = jnp.dot(st_ref[0], t[:, 0:c],       preferred_element_type=f32)
    z = z + jnp.dot(st_ref[1], t[:, c:2 * c],   preferred_element_type=f32)
    z = z + jnp.dot(st_ref[2], t[:, 2 * c:3 * c], preferred_element_type=f32)
    z = z + b2_ref[...]
    z = jnp.where(z >= 0, z, 0.2 * z)                                # LeakyReLU(0.2)

    o_ref[0] = z.astype(o_ref.dtype)


def dual_conv_upsample(x, w1, b1, w2, b2):
    """x: (N, Cin, H, W); w1: (Cout, Cin, 3, 3); w2: (Cout, Cout, 3, 3) (OIHW).
    Returns (N, Cout, 2H, 2W), matching the PyTorch module."""
    N, Cin, H, W = x.shape
    Cout = w1.shape[0]
    H2, W2 = 2 * H, 2 * W
    C = Cout * H2
    f32, bf16 = jnp.float32, jnp.bfloat16

    d = jnp.arange(3)                    # tap offsets (dy and dx)

    # --- conv1 W-side: nearest-x2 column upsample + dx shift + zero pad ---
    q = jnp.arange(W2)
    sq = q[None, :] + d[:, None] - 1                                  # (3, W2) fine src col
    vq = (sq >= 0) & (sq < W2)
    srcw = jnp.clip(sq, 0, W2 - 1) // 2                               # coarse src col
    R = ((jnp.arange(W)[None, :, None] == srcw[:, None, :])
         & vq[:, None, :]).astype(f32)                                # (3, W, W2)
    RT = jnp.transpose(R, (0, 2, 1))                                  # (3, W2, W)

    # --- conv1 H-side: nearest-x2 row upsample + dy shift + pad + channel mix ---
    p = jnp.arange(H2)
    sp = p[None, :] + d[:, None] - 1                                  # (3, H2) fine src row
    vp = (sp >= 0) & (sp < H2)
    srch = jnp.clip(sp, 0, H2 - 1) // 2                               # coarse src row
    M1 = ((jnp.arange(H)[None, None, :] == srch[:, :, None])
          & vp[:, :, None]).astype(f32)                               # (3, H2, H)
    B1 = jnp.einsum('oiyx,yph->xopih', w1.astype(f32), M1)            # (3, Cout, H2, Cin, H)
    B1 = B1.reshape(3, C, Cin * H)
    B1T_wide = jnp.transpose(B1, (2, 0, 1)).reshape(Cin * H, 3 * C)   # dx concat on lanes

    # --- conv2 H-side: dy shift + zero pad (fine res) + channel mix ---
    M2 = (p[None, None, :] == (p[None, :, None] + d[:, None, None] - 1)).astype(f32)  # (3, H2, H2)
    A2 = jnp.einsum('omyx,ypq->xopmq', w2.astype(f32), M2).reshape(3, C, C)
    A2T_wide = jnp.transpose(A2, (2, 0, 1)).reshape(C, 3 * C)

    # --- conv2 W-side: dx shift + zero pad (fine res) ---
    S = (q[None, :, None] == (q[None, None, :] + d[:, None, None] - 1)).astype(f32)   # (3, W2, W2)
    ST = jnp.transpose(S, (0, 2, 1))                                  # (3, W2, W2)

    b1row = jnp.repeat(b1.astype(f32), H2).reshape(1, C)
    b2row = jnp.repeat(b2.astype(f32), H2).reshape(1, C)

    # Lane-dense transposed input: (N, W, Cin*H), bf16 for the MXU.
    xt = jnp.transpose(x.reshape(N, Cin * H, W), (0, 2, 1)).astype(bf16)

    out_t = pl.pallas_call(
        _dual_conv_upsample_kernel,
        out_shape=jax.ShapeDtypeStruct((N, W2, C), x.dtype),
        grid=(N,),
        in_specs=[
            pl.BlockSpec((1, W, Cin * H), lambda n: (n, 0, 0)),
            pl.BlockSpec((Cin * H, 3 * C), lambda n: (0, 0)),
            pl.BlockSpec((3, W2, W), lambda n: (0, 0, 0)),
            pl.BlockSpec((C, 3 * C), lambda n: (0, 0)),
            pl.BlockSpec((3, W2, W2), lambda n: (0, 0, 0)),
            pl.BlockSpec((1, C), lambda n: (0, 0)),
            pl.BlockSpec((1, C), lambda n: (0, 0)),
        ],
        out_specs=pl.BlockSpec((1, W2, C), lambda n: (n, 0, 0)),
        compiler_params=pltpu.CompilerParams(
            dimension_semantics=("parallel",)),
    )(xt, B1T_wide.astype(bf16), RT, A2T_wide.astype(bf16), ST, b1row, b2row)

    # (N, W2, Cout*H2) -> (N, Cout, H2, W2): free-ish wrapper transpose.
    return jnp.transpose(out_t, (0, 2, 1)).reshape(N, Cout, H2, W2)


def _ref_forward(x, w1, b1, w2, b2):
    """Pure-JAX f32 reference of the PyTorch forward (for correctness check)."""
    up = jnp.repeat(jnp.repeat(x, 2, axis=2), 2, axis=3)
    dn = ('NCHW', 'OIHW', 'NCHW')
    y = lax.conv_general_dilated(up, w1, (1, 1), 'SAME', dimension_numbers=dn)
    y = y + b1[None, :, None, None]
    y = jnp.where(y >= 0, y, 0.2 * y)
    y = lax.conv_general_dilated(y, w2, (1, 1), 'SAME', dimension_numbers=dn)
    y = y + b2[None, :, None, None]
    y = jnp.where(y >= 0, y, 0.2 * y)
    return y


if __name__ == "__main__":
    N, in_ch, out_ch, H, W = 2, 4, 8, 16, 16

    key = jax.random.PRNGKey(0)
    kx, kw1, kb1, kw2, kb2 = jax.random.split(key, 5)

    # deterministic synthetic parameters (nn.Conv2d weight layout: OIHW, 3x3)
    x = jax.random.normal(kx, (N, in_ch, H, W), jnp.float32)
    w1 = jax.random.normal(kw1, (out_ch, in_ch, 3, 3), jnp.float32) * 0.1
    b1 = jax.random.normal(kb1, (out_ch,), jnp.float32) * 0.1
    w2 = jax.random.normal(kw2, (out_ch, out_ch, 3, 3), jnp.float32) * 0.1
    b2 = jax.random.normal(kb2, (out_ch,), jnp.float32) * 0.1

    out = dual_conv_upsample(x, w1, b1, w2, b2)
    out = jax.block_until_ready(out)

    ref = jax.block_until_ready(_ref_forward(x, w1, b1, w2, b2))
    assert out.shape == (N, out_ch, 2 * H, 2 * W), out.shape
    # bf16 operands on the large matmuls -> relaxed tolerance vs the f32 reference.
    assert jnp.allclose(out, ref, atol=5e-2, rtol=5e-2), "mismatch vs reference"

    print("KERNEL_OK")
</pallas_src>

<mosaic_0001>
module attributes {stable_mosaic.version = 11 : i64} {
  func.func @_dual_conv_upsample_kernel(%arg0: i32, %arg1: memref<1x16x64xbf16, #tpu.memory_space<vmem>>, %arg2: memref<64x768xbf16, #tpu.memory_space<vmem>>, %arg3: memref<3x32x16xf32, #tpu.memory_space<vmem>>, %arg4: memref<256x768xbf16, #tpu.memory_space<vmem>>, %arg5: memref<3x32x32xf32, #tpu.memory_space<vmem>>, %arg6: memref<1x256xf32, #tpu.memory_space<vmem>>, %arg7: memref<1x256xf32, #tpu.memory_space<vmem>>, %arg8: memref<1x32x256xf32, #tpu.memory_space<vmem>>) attributes {dimension_semantics = [#tpu.dimension_semantics<parallel>], iteration_bounds = array<i64: 2>, scalar_prefetch = 0 : i64, scratch_operands = 0 : i64, tpu.core_type = #tpu.core_type<tc>, window_params = [{transform_indices = @transform_0, window_bounds = array<i64: 1, 16, 64>}, {pipeline_mode = #tpu.pipeline_mode<synchronous>, transform_indices = @transform_1, window_bounds = array<i64: 64, 768>}, {pipeline_mode = #tpu.pipeline_mode<synchronous>, transform_indices = @transform_2, window_bounds = array<i64: 3, 32, 16>}, {pipeline_mode = #tpu.pipeline_mode<synchronous>, transform_indices = @transform_3, window_bounds = array<i64: 256, 768>}, {pipeline_mode = #tpu.pipeline_mode<synchronous>, transform_indices = @transform_4, window_bounds = array<i64: 3, 32, 32>}, {pipeline_mode = #tpu.pipeline_mode<synchronous>, transform_indices = @transform_5, window_bounds = array<i64: 1, 256>}, {pipeline_mode = #tpu.pipeline_mode<synchronous>, transform_indices = @transform_6, window_bounds = array<i64: 1, 256>}, {transform_indices = @transform_7, window_bounds = array<i64: 1, 32, 256>}]} {
    %c0 = arith.constant 0 : index
    %c0_0 = arith.constant 0 : index
    %c0_1 = arith.constant 0 : index
    %0 = vector.load %arg1[%c0, %c0_0, %c0_1] : memref<1x16x64xbf16, #tpu.memory_space<vmem>>, vector<1x16x64xbf16>
    %1 = vector.shape_cast %0 : vector<1x16x64xbf16> to vector<16x64xbf16>
    %c0_2 = arith.constant 0 : index
    %c0_3 = arith.constant 0 : index
    %2 = vector.load %arg2[%c0_2, %c0_3] : memref<64x768xbf16, #tpu.memory_space<vmem>>, vector<64x768xbf16>
    %cst = arith.constant dense<0.000000e+00> : vector<16x768xf32>
    %3 = tpu.matmul %1, %2, %cst {dimension_numbers = #tpu.dot_dimension_numbers<[1], [0], [0], [1], [0, 0, 1, 1], [], []>} : vector<16x64xbf16>, vector<64x768xbf16>, vector<16x768xf32> -> vector<16x768xf32>
    %c0_4 = arith.constant 0 : index
    %c0_5 = arith.constant 0 : index
    %c0_6 = arith.constant 0 : index
    %4 = vector.load %arg3[%c0_4, %c0_5, %c0_6] : memref<3x32x16xf32, #tpu.memory_space<vmem>>, vector<1x32x16xf32>
    %5 = vector.shape_cast %4 : vector<1x32x16xf32> to vector<32x16xf32>
    %6 = vector.extract_strided_slice %3 {offsets = [0, 0], sizes = [16, 256], strides = [1, 1]} : vector<16x768xf32> to vector<16x256xf32>
    %cst_7 = arith.constant dense<0.000000e+00> : vector<32x256xf32>
    %7 = tpu.matmul %5, %6, %cst_7 {dimension_numbers = #tpu.dot_dimension_numbers<[1], [0], [0], [1], [0, 0, 1, 1], [], []>} : vector<32x16xf32>, vector<16x256xf32>, vector<32x256xf32> -> vector<32x256xf32>
    %c1 = arith.constant 1 : index
    %c0_8 = arith.constant 0 : index
    %c0_9 = arith.constant 0 : index
    %8 = vector.load %arg3[%c1, %c0_8, %c0_9] : memref<3x32x16xf32, #tpu.memory_space<vmem>>, vector<1x32x16xf32>
    %9 = vector.shape_cast %8 : vector<1x32x16xf32> to vector<32x16xf32>
    %10 = vector.extract_strided_slice %3 {offsets = [0, 256], sizes = [16, 256], strides = [1, 1]} : vector<16x768xf32> to vector<16x256xf32>
    %cst_10 = arith.constant dense<0.000000e+00> : vector<32x256xf32>
    %11 = tpu.matmul %9, %10, %cst_10 {dimension_numbers = #tpu.dot_dimension_numbers<[1], [0], [0], [1], [0, 0, 1, 1], [], []>} : vector<32x16xf32>, vector<16x256xf32>, vector<32x256xf32> -> vector<32x256xf32>
    %12 = arith.addf %7, %11 : vector<32x256xf32>
    %c2 = arith.constant 2 : index
    %c0_11 = arith.constant 0 : index
    %c0_12 = arith.constant 0 : index
    %13 = vector.load %arg3[%c2, %c0_11, %c0_12] : memref<3x32x16xf32, #tpu.memory_space<vmem>>, vector<1x32x16xf32>
    %14 = vector.shape_cast %13 : vector<1x32x16xf32> to vector<32x16xf32>
    %15 = vector.extract_strided_slice %3 {offsets = [0, 512], sizes = [16, 256], strides = [1, 1]} : vector<16x768xf32> to vector<16x256xf32>
    %cst_13 = arith.constant dense<0.000000e+00> : vector<32x256xf32>
    %16 = tpu.matmul %14, %15, %cst_13 {dimension_numbers = #tpu.dot_dimension_numbers<[1], [0], [0], [1], [0, 0, 1, 1], [], []>} : vector<32x16xf32>, vector<16x256xf32>, vector<32x256xf32> -> vector<32x256xf32>
    %17 = arith.addf %12, %16 : vector<32x256xf32>
    %c0_14 = arith.constant 0 : index
    %c0_15 = arith.constant 0 : index
    %18 = vector.load %arg6[%c0_14, %c0_15] : memref<1x256xf32, #tpu.memory_space<vmem>>, vector<1x256xf32>
    %19 = vector.broadcast %18 : vector<1x256xf32> to vector<32x256xf32>
    %20 = arith.addf %17, %19 : vector<32x256xf32>
    %cst_16 = arith.constant 0.000000e+00 : f32
    %21 = vector.broadcast %cst_16 : f32 to vector<32x256xf32>
    %22 = arith.cmpf oge, %20, %21 : vector<32x256xf32>
    %cst_17 = arith.constant 2.000000e-01 : f32
    %23 = vector.broadcast %cst_17 : f32 to vector<32x256xf32>
    %24 = arith.mulf %23, %20 : vector<32x256xf32>
    %25 = arith.select %22, %20, %24 : vector<32x256xi1>, vector<32x256xf32>
    %26 = arith.truncf %25 : vector<32x256xf32> to vector<32x256xbf16>
    %c0_18 = arith.constant 0 : index
    %c0_19 = arith.constant 0 : index
    %27 = vector.load %arg4[%c0_18, %c0_19] : memref<256x768xbf16, #tpu.memory_space<vmem>>, vector<256x768xbf16>
    %cst_20 = arith.constant dense<0.000000e+00> : vector<32x768xf32>
    %28 = tpu.matmul %26, %27, %cst_20 {dimension_numbers = #tpu.dot_dimension_numbers<[1], [0], [0], [1], [0, 0, 1, 1], [], []>} : vector<32x256xbf16>, vector<256x768xbf16>, vector<32x768xf32> -> vector<32x768xf32>
    %c0_21 = arith.constant 0 : index
    %c0_22 = arith.constant 0 : index
    %c0_23 = arith.constant 0 : index
    %29 = vector.load %arg5[%c0_21, %c0_22, %c0_23] : memref<3x32x32xf32, #tpu.memory_space<vmem>>, vector<1x32x32xf32>
    %30 = vector.shape_cast %29 : vector<1x32x32xf32> to vector<32x32xf32>
    %31 = vector.extract_strided_slice %28 {offsets = [0, 0], sizes = [32, 256], strides = [1, 1]} : vector<32x768xf32> to vector<32x256xf32>
    %cst_24 = arith.constant dense<0.000000e+00> : vector<32x256xf32>
    %32 = tpu.matmul %30, %31, %cst_24 {dimension_numbers = #tpu.dot_dimension_numbers<[1], [0], [0], [1], [0, 0, 1, 1], [], []>} : vector<32x32xf32>, vector<32x256xf32>, vector<32x256xf32> -> vector<32x256xf32>
    %c1_25 = arith.constant 1 : index
    %c0_26 = arith.constant 0 : index
    %c0_27 = arith.constant 0 : index
    %33 = vector.load %arg5[%c1_25, %c0_26, %c0_27] : memref<3x32x32xf32, #tpu.memory_space<vmem>>, vector<1x32x32xf32>
    %34 = vector.shape_cast %33 : vector<1x32x32xf32> to vector<32x32xf32>
    %35 = vector.extract_strided_slice %28 {offsets = [0, 256], sizes = [32, 256], strides = [1, 1]} : vector<32x768xf32> to vector<32x256xf32>
    %cst_28 = arith.constant dense<0.000000e+00> : vector<32x256xf32>
    %36 = tpu.matmul %34, %35, %cst_28 {dimension_numbers = #tpu.dot_dimension_numbers<[1], [0], [0], [1], [0, 0, 1, 1], [], []>} : vector<32x32xf32>, vector<32x256xf32>, vector<32x256xf32> -> vector<32x256xf32>
    %37 = arith.addf %32, %36 : vector<32x256xf32>
    %c2_29 = arith.constant 2 : index
    %c0_30 = arith.constant 0 : index
    %c0_31 = arith.constant 0 : index
    %38 = vector.load %arg5[%c2_29, %c0_30, %c0_31] : memref<3x32x32xf32, #tpu.memory_space<vmem>>, vector<1x32x32xf32>
    %39 = vector.shape_cast %38 : vector<1x32x32xf32> to vector<32x32xf32>
    %40 = vector.extract_strided_slice %28 {offsets = [0, 512], sizes = [32, 256], strides = [1, 1]} : vector<32x768xf32> to vector<32x256xf32>
    %cst_32 = arith.constant dense<0.000000e+00> : vector<32x256xf32>
    %41 = tpu.matmul %39, %40, %cst_32 {dimension_numbers = #tpu.dot_dimension_numbers<[1], [0], [0], [1], [0, 0, 1, 1], [], []>} : vector<32x32xf32>, vector<32x256xf32>, vector<32x256xf32> -> vector<32x256xf32>
    %42 = arith.addf %37, %41 : vector<32x256xf32>
    %c0_33 = arith.constant 0 : index
    %c0_34 = arith.constant 0 : index
    %43 = vector.load %arg7[%c0_33, %c0_34] : memref<1x256xf32, #tpu.memory_space<vmem>>, vector<1x256xf32>
    %44 = vector.broadcast %43 : vector<1x256xf32> to vector<32x256xf32>
    %45 = arith.addf %42, %44 : vector<32x256xf32>
    %cst_35 = arith.constant 0.000000e+00 : f32
    %46 = vector.broadcast %cst_35 : f32 to vector<32x256xf32>
    %47 = arith.cmpf oge, %45, %46 : vector<32x256xf32>
    %cst_36 = arith.constant 2.000000e-01 : f32
    %48 = vector.broadcast %cst_36 : f32 to vector<32x256xf32>
    %49 = arith.mulf %48, %45 : vector<32x256xf32>
    %50 = arith.select %47, %45, %49 : vector<32x256xi1>, vector<32x256xf32>
    %c0_37 = arith.constant 0 : index
    %c0_38 = arith.constant 0 : index
    %c0_39 = arith.constant 0 : index
    %51 = vector.load %arg8[%c0_37, %c0_38, %c0_39] : memref<1x32x256xf32, #tpu.memory_space<vmem>>, vector<1x32x256xf32>
    %52 = vector.shape_cast %51 : vector<1x32x256xf32> to vector<32x256xf32>
    %53 = vector.shape_cast %50 : vector<32x256xf32> to vector<1x32x256xf32>
    tpu.vector_store %arg8[%c0_37, %c0_38, %c0_39], %53 {strides = array<i32>} : memref<1x32x256xf32, #tpu.memory_space<vmem>>, vector<1x32x256xf32>,
    return
  }
  func.func @transform_0(%arg0: i32) -> (i32, i32, i32) {
    %c0_i32 = arith.constant 0 : i32
    %c0_i32_0 = arith.constant 0 : i32
    %c0_i32_1 = arith.constant 0 : i32
    return %arg0, %c0_i32, %c0_i32_0 : i32, i32, i32
  }
  func.func @transform_1(%arg0: i32) -> (i32, i32) {
    %c0_i32 = arith.constant 0 : i32
    %c0_i32_0 = arith.constant 0 : i32
    %c0_i32_1 = arith.constant 0 : i32
    return %c0_i32, %c0_i32_0 : i32, i32
  }
  func.func @transform_2(%arg0: i32) -> (i32, i32, i32) {
    %c0_i32 = arith.constant 0 : i32
    %c0_i32_0 = arith.constant 0 : i32
    %c0_i32_1 = arith.constant 0 : i32
    %c0_i32_2 = arith.constant 0 : i32
    return %c0_i32, %c0_i32_0, %c0_i32_1 : i32, i32, i32
  }
  func.func @transform_3(%arg0: i32) -> (i32, i32) {
    %c0_i32 = arith.constant 0 : i32
    %c0_i32_0 = arith.constant 0 : i32
    %c0_i32_1 = arith.constant 0 : i32
    return %c0_i32, %c0_i32_0 : i32, i32
  }
  func.func @transform_4(%arg0: i32) -> (i32, i32, i32) {
    %c0_i32 = arith.constant 0 : i32
    %c0_i32_0 = arith.constant 0 : i32
    %c0_i32_1 = arith.constant 0 : i32
    %c0_i32_2 = arith.constant 0 : i32
    return %c0_i32, %c0_i32_0, %c0_i32_1 : i32, i32, i32
  }
  func.func @transform_5(%arg0: i32) -> (i32, i32) {
    %c0_i32 = arith.constant 0 : i32
    %c0_i32_0 = arith.constant 0 : i32
    %c0_i32_1 = arith.constant 0 : i32
    return %c0_i32, %c0_i32_0 : i32, i32
  }
  func.func @transform_6(%arg0: i32) -> (i32, i32) {
    %c0_i32 = arith.constant 0 : i32
    %c0_i32_0 = arith.constant 0 : i32
    %c0_i32_1 = arith.constant 0 : i32
    return %c0_i32, %c0_i32_0 : i32, i32
  }
  func.func @transform_7(%arg0: i32) -> (i32, i32, i32) {
    %c0_i32 = arith.constant 0 : i32
    %c0_i32_0 = arith.constant 0 : i32
    %c0_i32_1 = arith.constant 0 : i32
    return %arg0, %c0_i32, %c0_i32_0 : i32, i32, i32
  }
}

</mosaic_0001>

<bundles_post_ra>
// kernel: tpu_custom_call.1
= control target key start
LH: loop header
LB: loop body
LE: loop exit
PB: predicated region body
PF: predicated region fallthrough
CT: control target
= control target key end

     0   :  { %12 = vsyncpa [#allocation3], 0  ;;  %s3196_s0 = inlined_call_operand.vmem [shape: bf16[2,16,64], index: 0, kind: input, shape index: {}]   ;;  %s3197_s1 = inlined_call_operand.hbm [shape: bf16[64,768], index: 1, kind: input, shape index: {}]   ;;  %s3198_s2 = inlined_call_operand.vmem [shape: f32[3,32,16], index: 2, kind: input, shape index: {}]   ;;  %s3199_s3 = inlined_call_operand.hbm [shape: bf16[256,768], index: 3, kind: input, shape index: {}]   ;;  %s3200_s4 = inlined_call_operand.vmem [shape: f32[3,32,32], index: 4, kind: input, shape index: {}]   ;;  %s3201_s5 = inlined_call_operand.vmem [shape: f32[1,256], index: 5, kind: input, shape index: {}]   ;;  %s3202_s6 = inlined_call_operand.vmem [shape: f32[1,256], index: 6, kind: input, shape index: {}]   ;;  %s3203_s7 = inlined_call_operand.hbm [shape: f32[2,32,256], index: 7, kind: output, shape index: {}]  }
   0x1   :  { %13 = vsyncpa [#allocation6], 0 }
   0x2   :  { %14 = vsyncpa [#allocation4], 0 }
   0x3   :  { %16 = vsyncpa [#allocation4 + $0x1], 0  ;;  %s2855_s24 = smov 0   ;;  %s2857_s25 = smov 0  }
   0x4   :  { %s2859_s26 = smov 0   ;;  %s2861_s27 = smov 0  }
   0x5 LB: > { %s2876_s28 = sadd.s32 4294967295, %s2804_s27   ;;  %s2177_s29 = sadd.s32 4294967294, %s2804_s27   ;;  %s2804_s27 = sphi %s2861_s27, %s3223_s27   ;;  %s2800_s26 = sphi %s2859_s26, %s3222_s26   ;;  %s2796_s25 = sphi %s2857_s25, %s3221_s25   ;;  %s2792_s24 = sphi %s2855_s24, %s3220_s24  }
   0x6   : > { %s2880_s30 = sadd.s32 1, %s2804_s27   ;;  %s181_s8 = sadd.s32 1, %s2800_s26 }
   0x7   : > { %s178_s9 = ssub.s32 %s2804_s27, %s2880_s30  ;;  %p191_p0 = scmp.ne.s32.totalorder %s2800_s26, %s2796_s25 }
   0x8   : > { %p179_p1 = scmp.eq.s32.totalorder %s178_s9, 0  ;;  %p192_p2 = scmp.eq.s32.totalorder %s2876_s28, 1 }
   0x9   : > { %p197_p3 = scmp.ne.s32.totalorder %s2796_s25, %s2792_s24  ;;  %p198_p4 = scmp.eq.s32.totalorder %s2177_s29, 1 }
   0xa   : > { %s2891_s10 = scalar_select %p179_p1, %s2800_s26, %s181_s8  }
   0xb   : > { %p2893_p5 = por %p192_p2, %p191_p0  ;;  %p2897_p6 = por %p198_p4, %p197_p3 }
   0xc   : > { %3207 = sst [smem:[#allocation11_spill]] %s2891_s10  ;;  %p2178_p7 = scmp.ge.s32.totalorder %s2804_s27, 1 }
   0xd   : > { %s3208_s11 = scalar_select %p2893_p5, 1, 0 }
   0xe   : > { %s3209_s12 = scalar_select %p2897_p6, 1, 0 }
   0xf   : > { %p205_p8 = scmp.lt.s32.totalorder %s2804_s27, 3  ;;  %p3204_p9 = scmp.eq.s32.totalorder %s2876_s28, 0 }
  0x10   : > { %s2806_s14 = smov [#allocation2]   ;;  %s2807_s17 = smov [#allocation5]  }
  0x11   : > { %p2904_p10 = pnand %p2178_p7, %p205_p8  ;;  %s217_s15 = sshll.u32 %s2806_s14, 4  ;;  %s218_s15 = int_to_ptr.vmem [resolvable:$true] %s217_s15 }
  0x12   : > { %s233_s18 = sshll.u32 %s2807_s17, 4  ;;  %s2678_s21 = scalar_lea.hbm %s3197_s1, 3072  ;;  %s2916_s18 = int_to_ptr.vmem [resolvable:$true] %s233_s18 }
  0x13   : > { %s3210_s13 = scalar_select %p2904_p10, 1, 0 }
  0x14   : > { %p2441_p11 = pneg %p2904_p10  ;;  %p2679_p13 = scmp.ne.s32.totalorder %s3197_s1, %s2678_s21 }
  0x15   : > { %p2685_p3 = scmp.lt.u32.totalorder %s2678_s21, %s3197_s1 }
  0x16   : > { %p2912_p12 = pnand %p3204_p9, %p2441_p11 }
  0x18   : > { %p2680_p0 = pneg %p2912_p12 }
  0x1a   : > { %p2681_p1 = pnand %p2680_p0, %p2679_p13 }
  0x1c   : > { %p2682_p2 = pneg %p2681_p1 }
  0x1e   : > { %p2687_p4 = pnand %p2685_p3, %p2682_p2 }
  0x20   : > { %2690 = shalt.err (!%p2687_p4)
}
  0x21   : > { %s2691_s9 = scalar_lea.vmem %s218_s15, 3072  ;;  %p2699_p9 = scmp.lt.s32.totalorder %s218_s15, %s218_s15 }
  0x22   : > { %p2692_p7 = scmp.ne.s32.totalorder %s218_s15, %s2691_s9  ;;  %p2700_p6 = scmp.lt.s32.totalorder %s2691_s9, %s2691_s9 }
  0x24   : > { %p2694_p8 = pnand %p2692_p7, %p2680_p0  ;;  %p2701_p5 = por %p2700_p6, %p2699_p9 }
  0x26   : > { %p2695_p11 = pneg %p2694_p8 }
  0x28   : > { %p2702_p10 = pnand %p2701_p5, %p2695_p11 }
  0x2a   : > { %2705 = shalt.err (!%p2702_p10)
}
  0x2b   : > { %s2808_s14 = smov 384   ;;  %s2809_s17 = smov 24  }
  0x2c   : > { %2444 = dma.hbm_to_vmem [thread:$0]  (!%p2912_p12), %s3197_s1, 3072, %s218_s15, [#allocation3], %s2808_s14, %s2808_s14, %s2809_s17  }
  0x2d   : > { %s2706_s23 = scalar_lea.hbm %s3199_s3, 12288 }
  0x2e   : > { %p2707_p13 = scmp.ne.s32.totalorder %s3199_s3, %s2706_s23  ;;  %p2713_p9 = scmp.lt.u32.totalorder %s2706_s23, %s3199_s3 }
  0x30   : > { %p2709_p5 = pnand %p2707_p13, %p2680_p0 }
  0x32   : > { %p2710_p6 = pneg %p2709_p5 }
  0x34   : > { %p2715_p10 = pnand %p2713_p9, %p2710_p6 }
  0x36   : > { %2718 = shalt.err (!%p2715_p10)
}
  0x37   : > { %s2719_s15 = scalar_lea.vmem %s2916_s18, 12288  ;;  %p2727_p4 = scmp.lt.s32.totalorder %s2916_s18, %s2916_s18 }
  0x38   : > { %p2720_p1 = scmp.ne.s32.totalorder %s2916_s18, %s2719_s15  ;;  %p2728_p7 = scmp.lt.s32.totalorder %s2719_s15, %s2719_s15 }
  0x3a   : > { %p2722_p2 = pnand %p2720_p1, %p2680_p0  ;;  %p2729_p8 = por %p2728_p7, %p2727_p4 }
  0x3c   : > { %p2723_p3 = pneg %p2722_p2 }
  0x3e   : > { %p2730_p11 = pnand %p2729_p8, %p2723_p3 }
  0x40   : > { %2733 = shalt.err (!%p2730_p11)
}
  0x41   : > { %2447 = dma.hbm_to_vmem [thread:$0]  (!%p2912_p12), %s3199_s3, 12288, %s2916_s18, [#allocation6], %s2808_s14, %s2808_s14, %s2809_s17  }
  0x42   : > { %p3212_p13 = scmp.ne.s32.totalorder %s3210_s13, 0 }
  0x43   : > { %p3213_p5 = scmp.eq.s32.totalorder (!%p3212_p13), %s2876_s28, 0 }
  0x44   : > { %266 = sbr.rel (%p3212_p13) target bundleno = 1114 (0x45a), region = 48 }
  0x4b   : > { %2779 = dma.done.wait (%p3213_p5), [#allocation3], 3072   ;;  %p3214_p0 = pmov %p3213_p5 }
  0x4d   : > { %2781 = vsyncadd (%p3214_p0), [#allocation3], 4294964224  ;;  %p3215_p6 = pmov %p3214_p0 }
  0x4e   : > { %p3216_p9 = pmov %p3214_p0 }
  0x4f   : > { %2783 = dma.done.wait (%p3215_p6), [#allocation6], 12288  }
  0x50   : > { %2785 = vsyncadd (%p3216_p9), [#allocation6], 4294955008  ;;  %v2810_v0 = vmov 0   ;;  %p302_p12 = scmp.lt.s32.totalorder %s2876_s28, 1  ;;  %v2497_v1 = vld [vmem:[#allocation2 + $0xc] ss:$24 sps:$4 sm:$0xff]  }
  0x51   : > { %538 = vmatprep.mubr.bf16.mxu1 %v2810_v0  ;;  %495 = vmatprep.mubr.bf16.mxu0 %v2810_v0  ;;  %v2499_v2 = vld [vmem:[#allocation2 + $0x8] ss:$24 sps:$4 sm:$0xff]   ;;  %v2500_v3 = vld [vmem:[#allocation2 + $0x4] ss:$24 sps:$4 sm:$0xff]   ;;  %v2505_v6 = vld [vmem:[#allocation2 + $0x38] ss:$24 sps:$4 sm:$0xff]  }
  0x52   : > { %506 = vmatprep.subr.bf16.mxu1 %v2497_v1  ;;  %s303_s13 = scalar_select %p302_p12, %s2876_s28, 1  ;;  %v2502_v4 = vld [vmem:[#allocation2 + $0x3c] ss:$24 sps:$4 sm:$0xff]   ;;  %v2504_v5 = vld [vmem:[#allocation2] ss:$24 sps:$4 sm:$0xff]   ;;  %463 = vmatprep.subr.bf16.mxu0 %v2500_v3  ;;  %vm459_vm0 = vcmask 523264  }
  0x53   : > { %507 = vmatpush1.bf16.msra.mxu1 %v2499_v2  ;;  %v2506_v7 = vld [vmem:[#allocation2 + $0x34] ss:$24 sps:$4 sm:$0xff]   ;;  %464 = vmatpush1.bf16.msra.mxu0 %v2504_v5  ;;  %v2510_v9 = vld [vmem:[#allocation2 + $0x30] ss:$24 sps:$4 sm:$0xff]   ;;  %v2512_v11 = vld [vmem:[#allocation2 + $0x64] ss:$24 sps:$4 sm:$0xff]  }
  0x54   : > { %508 = vmatprep.subr.bf16.mxu1 %v2502_v4  ;;  %v2508_v8 = vld [vmem:[#allocation2 + $0x6c] ss:$24 sps:$4 sm:$0xff]   ;;  %465 = vmatprep.subr.bf16.mxu0 %v2506_v7  ;;  %v2511_v10 = vld [vmem:[#allocation2 + $0x68] ss:$24 sps:$4 sm:$0xff]   ;;  %s2357_s16 = sshll.u32 %s303_s13, 3  ;;  %v2811_v26 = vmov 0.0  }
  0x55   : > { %v2514_v12 = vld [vmem:[#allocation2 + $0x9c] ss:$24 sps:$4 sm:$0xff]   ;;  %v2516_v13 = vld [vmem:[#allocation2 + $0x60] ss:$24 sps:$4 sm:$0xff]   ;;  %s306_s17 = scalar_lea.vmem %s3196_s0, %s2357_s16  ;;  %v2521_v17 = vld [vmem:[#allocation2 + $0x90] ss:$24 sps:$4 sm:$0xff]  }
  0x56   : > { %v2518_v14 = vld [vmem:[#allocation2 + $0x94] ss:$24 sps:$4 sm:$0xff]   ;;  %v2517_v15 = vld [vmem:[#allocation2 + $0x98] ss:$24 sps:$4 sm:$0xff]   ;;  %v2520_v16 = vld [vmem:[%s306_s17] sm:$0xff]   ;;  %vm601_vm1 = vcmask 130048  }
  0x57   : > { %509 = vmatpush1.bf16.msra.mxu1 %v2505_v6  ;;  %466 = vmatpush1.bf16.msra.mxu0 %v2510_v9  ;;  %v2524_v18 = vld [vmem:[#allocation2 + $0x14] ss:$24 sps:$4 sm:$0xff]   ;;  %v2522_v19 = vld [vmem:[#allocation2 + $0x10] ss:$24 sps:$4 sm:$0xff]   ;;  %v2527_v20 = vld [vmem:[#allocation2 + $0x44] ss:$24 sps:$4 sm:$0xff]  }
  0x58   : > { %510 = vmatprep.subr.bf16.mxu1 %v2508_v8  ;;  %467 = vmatprep.subr.bf16.mxu0 %v2512_v11  ;;  %v2525_v21 = vld [vmem:[#allocation2 + $0x40] ss:$24 sps:$4 sm:$0xff]   ;;  %v2530_v22 = vld [vmem:[#allocation2 + $0x74] ss:$24 sps:$4 sm:$0xff]   ;;  %v2528_v23 = vld [vmem:[#allocation2 + $0x70] ss:$24 sps:$4 sm:$0xff]  }
  0x59   : > { %v2533_v24 = vld [vmem:[#allocation2 + $0xa4] ss:$24 sps:$4 sm:$0xff]   ;;  %v2531_v25 = vld [vmem:[#allocation2 + $0xa0] ss:$24 sps:$4 sm:$0xff]   ;;  %v2542_v29 = vld [vmem:[#allocation5 + $0x34] ss:$24 sps:$4 sm:$0xff]  }
  0x5a   : > { %v2534_v27 = vld [vmem:[#allocation5] ss:$24 sps:$4 sm:$0xff]   ;;  %v2536_v28 = vld [vmem:[#allocation5 + $0x4] ss:$24 sps:$4 sm:$0xff]   ;;  %v2540_v30 = vld [vmem:[#allocation5 + $0x30] ss:$24 sps:$4 sm:$0xff]  }
  0x5b   : > { %511 = vmatpush1.bf16.msra.mxu1 %v2511_v10  ;;  %468 = vmatpush1.bf16.msra.mxu0 %v2516_v13  ;;  %v2548_v31 = vld [vmem:[#allocation5 + $0x64] ss:$24 sps:$4 sm:$0xff]   ;;  %v2546_v32 = vld [vmem:[#allocation5 + $0x60] ss:$24 sps:$4 sm:$0xff]   ;;  %v2554_v33 = vld [vmem:[#allocation5 + $0x94] ss:$24 sps:$4 sm:$0xff]  }
  0x5c   : > { %512 = vmatprep.subr.bf16.mxu1 %v2514_v12  ;;  %469 = vmatprep.subr.bf16.mxu0 %v2518_v14  ;;  %v2552_v34 = vld [vmem:[#allocation5 + $0x90] ss:$24 sps:$4 sm:$0xff]   ;;  %v2560_v35 = vld [vmem:[#allocation5 + $0xc4] ss:$24 sps:$4 sm:$0xff]   ;;  %v2558_v36 = vld [vmem:[#allocation5 + $0xc0] ss:$24 sps:$4 sm:$0xff]  }
  0x5d   : > { %v2566_v37 = vld [vmem:[#allocation5 + $0xf4] ss:$24 sps:$4 sm:$0xff]   ;;  %v2564_v38 = vld [vmem:[#allocation5 + $0xf0] ss:$24 sps:$4 sm:$0xff]   ;;  %v2572_v39 = vld [vmem:[#allocation5 + $0x124] ss:$24 sps:$4 sm:$0xff]  }
  0x5e   : > { %v2570_v40 = vld [vmem:[#allocation5 + $0x120] ss:$24 sps:$4 sm:$0xff]   ;;  %v2578_v41 = vld [vmem:[#allocation5 + $0x154] ss:$24 sps:$4 sm:$0xff]   ;;  %v2576_v42 = vld [vmem:[#allocation5 + $0x150] ss:$24 sps:$4 sm:$0xff]  }
  0x5f   : > { %513 = vmatpush1.bf16.msra.mxu1 %v2517_v15  ;;  %470 = vmatpush1.bf16.msra.mxu0 %v2521_v17  ;;  %v2584_v43 = vld [vmem:[#allocation5 + $0x184] ss:$24 sps:$4 sm:$0xff]   ;;  %v2582_v44 = vld [vmem:[#allocation5 + $0x180] ss:$24 sps:$4 sm:$0xff]   ;;  %v2590_v45 = vld [vmem:[#allocation5 + $0x1b4] ss:$24 sps:$4 sm:$0xff]  }
  0x60   : > { %549 = vmatprep.subr.bf16.mxu0 %v2524_v18  ;;  %v2588_v46 = vld [vmem:[#allocation5 + $0x1b0] ss:$24 sps:$4 sm:$0xff]   ;;  %v2596_v47 = vld [vmem:[#allocation5 + $0x1e4] ss:$24 sps:$4 sm:$0xff]   ;;  %v2594_v48 = vld [vmem:[#allocation5 + $0x1e0] ss:$24 sps:$4 sm:$0xff]  }
  0x61   : > { %v2602_v49 = vld [vmem:[#allocation5 + $0x214] ss:$24 sps:$4 sm:$0xff]   ;;  %v2600_v50 = vld [vmem:[#allocation5 + $0x210] ss:$24 sps:$4 sm:$0xff]   ;;  %v2608_v51 = vld [vmem:[#allocation5 + $0x244] ss:$24 sps:$4 sm:$0xff]  }
  0x62   : > { %2214 = vmatmul.mubr.msk.bf16.vlgmr.msra.gmra.mrb[0].mxu1 %vm459_vm0, %v2520_v16  ;;  %2213 = vmatmul.mubr.msk.bf16.vlgmr.msra.gmra.mrb[0].mxu0 %vm459_vm0, %v2520_v16  ;;  %v2606_v52 = vld [vmem:[#allocation5 + $0x240] ss:$24 sps:$4 sm:$0xff]   ;;  %v2217_v2 = vld [vmem:[%s3198_s2 + $0x28] sm:$0xff]  ;;  %v2218_v3 = vld [vmem:[%s3198_s2 + $0x30] sm:$0xff]  ;;  %vm1710_vm10 = vcmask 261120   ;;  %s299_s15 = sand.u32 1, %s2796_s25  }
  0x63   : > { %550 = vmatpush1.bf16.msra.mxu0 %v2522_v19  ;;  %581 = vmatprep.mubr.bf16.mxu0 %v2810_v0  ;;  %v2216_v1 = vld [vmem:[%s3198_s2 + $0x20] sm:$0xff]  ;;  %v2219_v6 = vld [vmem:[%s3198_s2 + $0x38] sm:$0xff]  ;;  %v593_v13 = vld [vmem:[%s3198_s2 + $0x8] sm:$0xff]  ;;  %s2185_s10 = sshll.u32 %s299_s15, 6  ;;  %s2358_s13 = sshll.u32 %s2876_s28, 10 }
  0x64   : > { %551 = vmatprep.subr.bf16.mxu0 %v2527_v20  ;;  %678 = vmatprep.mubr.f32.mxu1 %v2811_v26  ;;  %v592_v11 = vld [vmem:[%s3198_s2] sm:$0xff]  ;;  %v594_v14 = vld [vmem:[%s3198_s2 + $0x10] sm:$0xff]  ;;  %v595_v15 = vld [vmem:[%s3198_s2 + $0x18] sm:$0xff]  ;;  %s3134_s19 = scalar_lea.vmem [#allocation7], %s2185_s10  ;;  %s3147_s17 = scalar_lea.hbm %s3203_s7, %s2358_s13 }
  0x65   : > { %v2539_v12 = vld [vmem:[#allocation5 + $0xc] ss:$24 sps:$4 sm:$0xff]   ;;  %v2537_v17 = vld [vmem:[#allocation5 + $0x8] ss:$24 sps:$4 sm:$0xff]   ;;  %v2545_v18 = vld [vmem:[#allocation5 + $0x3c] ss:$24 sps:$4 sm:$0xff]  }
  0x66   : > { %v2229_v19 = vld [vmem:[%s3198_s2 + $0x48] sm:$0xff]  ;;  %v2543_v20 = vld [vmem:[#allocation5 + $0x38] ss:$24 sps:$4 sm:$0xff]   ;;  %s2093_s16 = sshll.u32 %s3134_s19, 4  ;;  %s3155_s28 = scalar_lea.sflag [#allocation4], %s299_s15  ;;  %s3149_s16 = int_to_ptr.vmem [resolvable:$true] %s2093_s16 }
  0x67   : > { %552 = vmatpush1.bf16.msra.mxu0 %v2525_v21  ;;  %v2551_v21 = vld [vmem:[#allocation5 + $0x6c] ss:$24 sps:$4 sm:$0xff]   ;;  %s2734_s20 = scalar_lea.vmem %s3149_s16, 1024  ;;  %p3217_p1 = scmp.ne.s32.totalorder %s3208_s11, 0 }
  0x68   : > { %553 = vmatprep.subr.bf16.mxu0 %v2530_v22  ;;  %v2230_v22 = vld [vmem:[%s3198_s2 + $0x50] sm:$0xff]  ;;  %p2735_p10 = scmp.ne.s32.totalorder %s3149_s16, %s2734_s20  ;;  %s2812_s21 = smov [#allocation7]  }
  0x69   : > { %s2738_s22 = sshll.u32 %s2812_s21, 4  ;;  %s2739_s22 = int_to_ptr.vmem [resolvable:$false] %s2738_s22 }
  0x6a   : > { %p2736_p2 = pnand %p2735_p10, %p3217_p1  ;;  %s2740_s23 = scalar_lea.vmem %s2739_s22, 2048 }
  0x6b   : > { %554 = vmatpush1.bf16.msra.mxu0 %v2528_v23  ;;  %v2549_v23 = vld [vmem:[#allocation5 + $0x68] ss:$24 sps:$4 sm:$0xff]   ;;  %p2741_p4 = scmp.lt.s32.totalorder %s3149_s16, %s2739_s22  ;;  %p2742_p7 = scmp.lt.s32.totalorder %s2740_s23, %s2734_s20 }
  0x6c   : > { %555 = vmatprep.subr.bf16.mxu0 %v2533_v24  ;;  %v2557_v24 = vld [vmem:[#allocation5 + $0x9c] ss:$24 sps:$4 sm:$0xff]   ;;  %p2737_p3 = pneg %p2736_p2 }
  0x6d   : > { %p2743_p8 = por %p2742_p7, %p2741_p4 }
  0x6f   : > { %556 = vmatpush1.bf16.msra.mxu0 %v2531_v25  ;;  %v2231_v25 = vld [vmem:[%s3198_s2 + $0x58] sm:$0xff]  ;;  %p2744_p11 = pnand %p2743_p8, %p2737_p3 }
  0x70   : > { %1542 = vmatprep.subr.bf16.mxu0 %v2536_v28  ;;  %v2563_v28 = vld [vmem:[#allocation5 + $0xcc] ss:$24 sps:$4 sm:$0xff]  }
  0x72   : > { %2215 = vmatmul.mubr.msk.bf16.vlgmr.msra.gmra.mrb[4].mxu0 %vm459_vm0, %v2520_v16  ;;  %v2228_v16 = vld [vmem:[%s3198_s2 + $0x40] sm:$0xff] }
  0x73   : > { %1543 = vmatpush1.bf16.msra.mxu0 %v2534_v27  ;;  %v2555_v27 = vld [vmem:[#allocation5 + $0x98] ss:$24 sps:$4 sm:$0xff]  }
  0x74   : > { %1544 = vmatprep.subr.bf16.mxu0 %v2542_v29  ;;  %v2561_v29 = vld [vmem:[#allocation5 + $0xc8] ss:$24 sps:$4 sm:$0xff]  }
  0x77   : > { %1545 = vmatpush1.bf16.msra.mxu0 %v2540_v30  ;;  %v2569_v30 = vld [vmem:[#allocation5 + $0xfc] ss:$24 sps:$4 sm:$0xff]  }
  0x78   : > { %1546 = vmatprep.subr.bf16.mxu0 %v2548_v31  ;;  %v2567_v31 = vld [vmem:[#allocation5 + $0xf8] ss:$24 sps:$4 sm:$0xff]  }
  0x7b   : > { %1547 = vmatpush1.bf16.msra.mxu0 %v2546_v32  ;;  %v2575_v32 = vld [vmem:[#allocation5 + $0x12c] ss:$24 sps:$4 sm:$0xff]  }
  0x7c   : > { %1548 = vmatprep.subr.bf16.mxu0 %v2554_v33  ;;  %v2573_v33 = vld [vmem:[#allocation5 + $0x128] ss:$24 sps:$4 sm:$0xff]  }
  0x7f   : > { %1549 = vmatpush1.bf16.msra.mxu0 %v2552_v34  ;;  %v2581_v34 = vld [vmem:[#allocation5 + $0x15c] ss:$24 sps:$4 sm:$0xff]  }
  0x80   : > { %1550 = vmatprep.subr.bf16.mxu0 %v2560_v35  ;;  %v2579_v35 = vld [vmem:[#allocation5 + $0x158] ss:$24 sps:$4 sm:$0xff]  }
  0x83   : > { %1551 = vmatpush1.bf16.msra.mxu0 %v2558_v36  ;;  %v2587_v36 = vld [vmem:[#allocation5 + $0x18c] ss:$24 sps:$4 sm:$0xff]  }
  0x84   : > { %1552 = vmatprep.subr.bf16.mxu0 %v2566_v37  ;;  %v2585_v37 = vld [vmem:[#allocation5 + $0x188] ss:$24 sps:$4 sm:$0xff]  }
  0x87   : > { %1553 = vmatpush1.bf16.msra.mxu0 %v2564_v38  ;;  %v2593_v38 = vld [vmem:[#allocation5 + $0x1bc] ss:$24 sps:$4 sm:$0xff]  }
  0x88   : > { %1554 = vmatprep.subr.bf16.mxu0 %v2572_v39  ;;  %v2591_v39 = vld [vmem:[#allocation5 + $0x1b8] ss:$24 sps:$4 sm:$0xff]  }
  0x8b   : > { %1555 = vmatpush1.bf16.msra.mxu0 %v2570_v40  ;;  %v2599_v40 = vld [vmem:[#allocation5 + $0x1ec] ss:$24 sps:$4 sm:$0xff]  }
  0x8c   : > { %1556 = vmatprep.subr.bf16.mxu0 %v2578_v41  ;;  %v2597_v41 = vld [vmem:[#allocation5 + $0x1e8] ss:$24 sps:$4 sm:$0xff]  }
  0x8f   : > { %1557 = vmatpush1.bf16.msra.mxu0 %v2576_v42  ;;  %v2605_v42 = vld [vmem:[#allocation5 + $0x21c] ss:$24 sps:$4 sm:$0xff]  }
  0x90   : > { %1558 = vmatprep.subr.bf16.mxu0 %v2584_v43  ;;  %v2603_v43 = vld [vmem:[#allocation5 + $0x218] ss:$24 sps:$4 sm:$0xff]  }
  0x93   : > { %1559 = vmatpush1.bf16.msra.mxu0 %v2582_v44  ;;  %v2611_v44 = vld [vmem:[#allocation5 + $0x24c] ss:$24 sps:$4 sm:$0xff]  }
  0x94   : > { %1560 = vmatprep.subr.bf16.mxu0 %v2590_v45  ;;  %v2609_v45 = vld [vmem:[#allocation5 + $0x248] ss:$24 sps:$4 sm:$0xff]  }
  0x97   : > { %1561 = vmatpush1.bf16.msra.mxu0 %v2588_v46  ;;  %v2614_v46 = vld [vmem:[#allocation5 + $0x274] ss:$24 sps:$4 sm:$0xff]  }
  0x98   : > { %1562 = vmatprep.subr.bf16.mxu0 %v2596_v47  ;;  %v2612_v47 = vld [vmem:[#allocation5 + $0x270] ss:$24 sps:$4 sm:$0xff]  }
  0x9b   : > { %1563 = vmatpush1.bf16.msra.mxu0 %v2594_v48  ;;  %v2617_v48 = vld [vmem:[#allocation5 + $0x27c] ss:$24 sps:$4 sm:$0xff]  }
  0x9c   : > { %1564 = vmatprep.subr.bf16.mxu0 %v2602_v49  ;;  %v2615_v49 = vld [vmem:[#allocation5 + $0x278] ss:$24 sps:$4 sm:$0xff]  }
  0x9f   : > { %1565 = vmatpush1.bf16.msra.mxu0 %v2600_v50  ;;  %v2620_v50 = vld [vmem:[#allocation5 + $0x2a4] ss:$24 sps:$4 sm:$0xff]  }
  0xa0   : > { %1566 = vmatprep.subr.bf16.mxu0 %v2608_v51  ;;  %v2618_v51 = vld [vmem:[#allocation5 + $0x2a0] ss:$24 sps:$4 sm:$0xff]  }
  0xa3   : > { %1567 = vmatpush1.bf16.msra.mxu0 %v2606_v52  ;;  %v2623_v52 = vld [vmem:[#allocation5 + $0x2ac] ss:$24 sps:$4 sm:$0xff]  }
  0xa4   : > { %1568 = vmatprep.subr.bf16.mxu0 %v2614_v46  ;;  %v2644_v46 = vld [vmem:[#allocation5 + $0xd4] ss:$24 sps:$4 sm:$0xff]  }
  0xa7   : > { %1569 = vmatpush1.bf16.msra.mxu0 %v2612_v47  ;;  %v2642_v47 = vld [vmem:[#allocation5 + $0xd0] ss:$24 sps:$4 sm:$0xff]  }
  0xa8   : > { %1570 = vmatprep.subr.bf16.mxu0 %v2620_v50  ;;  %v2650_v50 = vld [vmem:[#allocation5 + $0x134] ss:$24 sps:$4 sm:$0xff]  }
  0xab   : > { %1571 = vmatpush1.bf16.msra.mxu0 %v2618_v51  ;;  %v2648_v51 = vld [vmem:[#allocation5 + $0x130] ss:$24 sps:$4 sm:$0xff]  }
 0x135   : > { %v540_v53 = vpop.f32.mrb[0].mxu1  ;;  %v497_v56 = vpop.f32.mrb[0].mxu0 }
 0x136   : > { %v542_v54 = vpop.f32.mrb[1].mxu1  ;;  %v499_v59 = vpop.f32.mrb[1].mxu0 }
 0x137   : > { %v544_v55 = vpop.f32.mrb[2].mxu1  ;;  %v501_v61 = vpop.f32.mrb[2].mxu0 }
 0x138   : > { %v2361_v57 = vpack.c.bf16 %v544_v55, %v540_v53  ;;  %v546_v58 = vpop.f32.mrb[3].mxu1  ;;  %v2365_v62 = vpack.c.bf16 %v501_v61, %v497_v56  ;;  %v503_v63 = vpop.f32.mrb[3].mxu0  ;;  %v2621_v53 = vld [vmem:[#allocation5 + $0x2a8] ss:$24 sps:$4 sm:$0xff]   ;;  %v2629_v56 = vld [vmem:[#allocation5 + $0x2dc] ss:$24 sps:$4 sm:$0xff]  }
 0x139   : > { %v2359_v60 = vpack.c.bf16 %v546_v58, %v542_v54  ;;  %v2363_v0 = vpack.c.bf16 %v503_v63, %v499_v59  ;;  %v2626_v54 = vld [vmem:[#allocation5 + $0x2d4] ss:$24 sps:$4 sm:$0xff]   ;;  %v2624_v55 = vld [vmem:[#allocation5 + $0x2d0] ss:$24 sps:$4 sm:$0xff]   ;;  %v920_v59 = vlaneseq }
 0x13a   : > { %1572 = vmatprep.subr.bf16.mxu0 %v2626_v54  ;;  %v2632_v58 = vld [vmem:[#allocation5 + $0x14] ss:$24 sps:$4 sm:$0xff]  }
 0x13b   : > { %2360 = vmatprep.subr.bf16.mxu1 %v2359_v60  ;;  %1573 = vmatpush1.bf16.msra.mxu0 %v2624_v55  ;;  %v3043_v60 = vshrl.u32 %v920_v59, 7  ;;  %v2656_v54 = vld [vmem:[#allocation5 + $0x194] ss:$24 sps:$4 sm:$0xff]   ;;  %v2654_v55 = vld [vmem:[#allocation5 + $0x190] ss:$24 sps:$4 sm:$0xff]  }
 0x13c   : > { %2362 = vmatpush1.bf16.msra.mxu1 %v2361_v57  ;;  %v2627_v57 = vld [vmem:[#allocation5 + $0x2d8] ss:$24 sps:$4 sm:$0xff]   ;;  %1648 = vmatprep.subr.bf16.mxu0 %v2632_v58  ;;  %v2662_v58 = vld [vmem:[#allocation5 + $0x1f4] ss:$24 sps:$4 sm:$0xff]  }
 0x13d   : > { %2364 = vmatprep.subr.bf16.mxu1 %v2363_v0  ;;  %v922_v61 = vsub.s32 0, %v3043_v60  ;;  %v926_v63 = vsub.s32 1, %v3043_v60  ;;  %v2660_v59 = vld [vmem:[#allocation5 + $0x1f0] ss:$24 sps:$4 sm:$0xff]  }
 0x13f   : > { %2220 = vmatmul.mubr.msk.f32.vlgmr.msra.gmra.mrb[4].mxu1 %vm601_vm1, %v2216_v1 }
 0x140   : > { %2366 = vmatpush1.bf16.msra.mxu1 %v2365_v62  ;;  %684 = vmatprep.mubr.f32.mxu1 %v2811_v26  ;;  %v918_v62 = vld [vmem:[%s3201_s5] sm:$0x3] }
 0x141   : > { %v923_v0 = vrot.slane %v918_v62, %v922_v61  ;;  %v927_v1 = vrot.slane %v918_v62, %v926_v63  ;;  %v2665_v62 = vld [vmem:[#allocation5 + $0x224] ss:$24 sps:$4 sm:$0xff]  }
 0x143   : > { %2221 = vmatmul.mubr.msk.f32.gmra.mrb[6].mxu1 %vm601_vm1, %v2217_v2 }
 0x144   : > { %690 = vmatprep.mubr.f32.mxu1 %v2811_v26 }
 0x145   : > { %v583_v4 = vpop.f32.mrb[4].mxu0 }
 0x146   : > { %v585_v5 = vpop.f32.mrb[5].mxu0 }
 0x147   : > { %2222 = vmatmul.mubr.msk.f32.gmra.mrb[8].mxu1 %vm601_vm1, %v2218_v3  ;;  %v587_v7 = vpop.f32.mrb[6].mxu0 }
 0x148   : > { %696 = vmatprep.mubr.f32.mxu1 %v2811_v26  ;;  %v2369_v8 = vpack.c.bf16 %v587_v7, %v583_v4  ;;  %v589_v9 = vpop.f32.mrb[7].mxu0 }
 0x149   : > { %v2367_v10 = vpack.c.bf16 %v589_v9, %v585_v5 }
 0x14b   : > { %2223 = vmatmul.mubr.msk.f32.gmra.mrb[10].mxu1 %vm601_vm1, %v2219_v6  ;;  %2368 = vmatprep.subr.bf16.mxu1 %v2367_v10 }
 0x14c   : > { %779 = vmatprep.mubr.f32.mxu1 %v2811_v26 }
 0x14f   : > { %2224 = vmatmul.mubr.msk.f32.vlgmr.msra.gmra.mrb[4].mxu1 %vm601_vm1, %v592_v11 }
 0x150   : > { %2370 = vmatpush1.bf16.msra.mxu1 %v2369_v8  ;;  %785 = vmatprep.mubr.f32.mxu1 %v2811_v26 }
 0x151   : > { %1595 = vmatprep.subr.bf16.mxu1 %v2539_v12 }
 0x153   : > { %2225 = vmatmul.mubr.msk.f32.gmra.mrb[6].mxu1 %vm601_vm1, %v593_v13 }
 0x154   : > { %791 = vmatprep.mubr.f32.mxu1 %v2811_v26 }
 0x157   : > { %2226 = vmatmul.mubr.msk.f32.gmra.mrb[8].mxu1 %vm601_vm1, %v594_v14 }
 0x158   : > { %797 = vmatprep.mubr.f32.mxu1 %v2811_v26 }
 0x15b   : > { %2227 = vmatmul.mubr.msk.f32.gmra.mrb[10].mxu1 %vm601_vm1, %v595_v15 }
 0x15c   : > { %885 = vmatprep.mubr.f32.mxu1 %v2811_v26 }
 0x15f   : > { %2232 = vmatmul.mubr.msk.f32.vlgmr.msra.gmra.mrb[4].mxu1 %vm601_vm1, %v2228_v16 }
 0x160   : > { %891 = vmatprep.mubr.f32.mxu1 %v2811_v26  ;;  %1596 = vmatpush1.bf16.msra.mxu1 %v2537_v17 }
 0x161   : > { %1597 = vmatprep.subr.bf16.mxu1 %v2545_v18 }
 0x163   : > { %2233 = vmatmul.mubr.msk.f32.gmra.mrb[6].mxu1 %vm601_vm1, %v2229_v19 }
 0x164   : > { %897 = vmatprep.mubr.f32.mxu1 %v2811_v26  ;;  %1598 = vmatpush1.bf16.msra.mxu1 %v2543_v20 }
 0x165   : > { %1599 = vmatprep.subr.bf16.mxu1 %v2551_v21 }
 0x167   : > { %2234 = vmatmul.mubr.msk.f32.gmra.mrb[8].mxu1 %vm601_vm1, %v2230_v22 }
 0x168   : > { %903 = vmatprep.mubr.f32.mxu1 %v2811_v26  ;;  %1600 = vmatpush1.bf16.msra.mxu1 %v2549_v23 }
 0x169   : > { %1601 = vmatprep.subr.bf16.mxu1 %v2557_v24  ;;  %v2630_v24 = vld [vmem:[#allocation5 + $0x10] ss:$24 sps:$4 sm:$0xff]  }
 0x16b   : > { %2235 = vmatmul.mubr.msk.f32.gmra.mrb[10].mxu1 %vm601_vm1, %v2231_v25 }
 0x16c   : > { %1602 = vmatpush1.bf16.msra.mxu1 %v2555_v27  ;;  %v2635_v27 = vld [vmem:[#allocation5 + $0x44] ss:$24 sps:$4 sm:$0xff]  }
 0x16d   : > { %1603 = vmatprep.subr.bf16.mxu1 %v2563_v28 }
 0x170   : > { %1604 = vmatpush1.bf16.msra.mxu1 %v2561_v29 }
 0x171   : > { %1605 = vmatprep.subr.bf16.mxu1 %v2569_v30 }
 0x174   : > { %1606 = vmatpush1.bf16.msra.mxu1 %v2567_v31 }
 0x175   : > { %1607 = vmatprep.subr.bf16.mxu1 %v2575_v32 }
 0x178   : > { %1608 = vmatpush1.bf16.msra.mxu1 %v2573_v33 }
 0x179   : > { %1609 = vmatprep.subr.bf16.mxu1 %v2581_v34  ;;  %v2633_v34 = vld [vmem:[#allocation5 + $0x40] ss:$24 sps:$4 sm:$0xff]  }
 0x17c   : > { %1610 = vmatpush1.bf16.msra.mxu1 %v2579_v35 }
 0x17d   : > { %1611 = vmatprep.subr.bf16.mxu1 %v2587_v36  ;;  %v2638_v36 = vld [vmem:[#allocation5 + $0x74] ss:$24 sps:$4 sm:$0xff]  }
 0x180   : > { %1612 = vmatpush1.bf16.msra.mxu1 %v2585_v37 }
 0x181   : > { %1613 = vmatprep.subr.bf16.mxu1 %v2593_v38 }
 0x184   : > { %1614 = vmatpush1.bf16.msra.mxu1 %v2591_v39 }
 0x185   : > { %1615 = vmatprep.subr.bf16.mxu1 %v2599_v40 }
 0x188   : > { %1616 = vmatpush1.bf16.msra.mxu1 %v2597_v41 }
 0x189   : > { %1617 = vmatprep.subr.bf16.mxu1 %v2605_v42 }
 0x18c   : > { %1618 = vmatpush1.bf16.msra.mxu1 %v2603_v43  ;;  %v2636_v43 = vld [vmem:[#allocation5 + $0x70] ss:$24 sps:$4 sm:$0xff]  }
 0x18d   : > { %1619 = vmatprep.subr.bf16.mxu1 %v2611_v44  ;;  %v2641_v44 = vld [vmem:[#allocation5 + $0xa4] ss:$24 sps:$4 sm:$0xff]  }
 0x190   : > { %1620 = vmatpush1.bf16.msra.mxu1 %v2609_v45  ;;  %v2639_v45 = vld [vmem:[#allocation5 + $0xa0] ss:$24 sps:$4 sm:$0xff]  }
 0x191   : > { %1621 = vmatprep.subr.bf16.mxu1 %v2617_v48  ;;  %v2647_v48 = vld [vmem:[#allocation5 + $0x104] ss:$24 sps:$4 sm:$0xff]  }
 0x194   : > { %1622 = vmatpush1.bf16.msra.mxu1 %v2615_v49  ;;  %v2645_v49 = vld [vmem:[#allocation5 + $0x100] ss:$24 sps:$4 sm:$0xff]  }
 0x195   : > { %1623 = vmatprep.subr.bf16.mxu1 %v2623_v52  ;;  %v2653_v52 = vld [vmem:[#allocation5 + $0x164] ss:$24 sps:$4 sm:$0xff]  }
 0x198   : > { %1624 = vmatpush1.bf16.msra.mxu1 %v2621_v53  ;;  %v2651_v53 = vld [vmem:[#allocation5 + $0x160] ss:$24 sps:$4 sm:$0xff]  }
 0x199   : > { %1625 = vmatprep.subr.bf16.mxu1 %v2629_v56  ;;  %v2659_v56 = vld [vmem:[#allocation5 + $0x1c4] ss:$24 sps:$4 sm:$0xff]  }
 0x19c   : > { %1626 = vmatpush1.bf16.msra.mxu1 %v2627_v57  ;;  %v2657_v57 = vld [vmem:[#allocation5 + $0x1c0] ss:$24 sps:$4 sm:$0xff]  }
 0x232   : > { %v887_v2 = vpop.f32.mrb[4].mxu1 }
 0x233   : > { %v930_v3 = vadd.f32 %v923_v0, %v887_v2  ;;  %v889_v4 = vpop.f32.mrb[5].mxu1  ;;  %v2666_v2 = vld [vmem:[#allocation5 + $0x250] ss:$24 sps:$4 sm:$0xff]  }
 0x234   : > { %v931_v5 = vadd.f32 %v927_v1, %v889_v4  ;;  %v2669_v4 = vld [vmem:[#allocation5 + $0x280] ss:$24 sps:$4 sm:$0xff]  }
 0x235   : > { %v946_v7 = vmul.f32 0.2, %v930_v3  ;;  %vm938_vm2 = vcmp.ge.f32.partialorder %v930_v3, 0.0 }
 0x236   : > { %v893_v6 = vpop.f32.mrb[6].mxu1  ;;  %v947_v10 = vmul.f32 0.2, %v931_v5  ;;  %vm939_vm3 = vcmp.ge.f32.partialorder %v931_v5, 0.0 }
 0x237   : > { %v932_v8 = vadd.f32 %v923_v0, %v893_v6  ;;  %v895_v9 = vpop.f32.mrb[7].mxu1  ;;  %v954_v15 = vsel %vm938_vm2, %v930_v3, %v946_v7  ;;  %v2671_v3 = vld [vmem:[#allocation5 + $0x284] ss:$24 sps:$4 sm:$0xff]   ;;  %v2672_v6 = vld [vmem:[#allocation5 + $0x2b0] ss:$24 sps:$4 sm:$0xff]  }
 0x238   : > { %v933_v11 = vadd.f32 %v927_v1, %v895_v9  ;;  %v955_v21 = vsel %vm939_vm3, %v931_v5, %v947_v10  ;;  %v2674_v5 = vld [vmem:[#allocation5 + $0x2b4] ss:$24 sps:$4 sm:$0xff]   ;;  %v2677_v7 = vld [vmem:[#allocation5 + $0x2e4] ss:$24 sps:$4 sm:$0xff]  }
 0x239   : > { %vm940_vm4 = vcmp.ge.f32.partialorder %v932_v8, 0.0  ;;  %v948_v12 = vmul.f32 0.2, %v932_v8 }
 0x23a   : > { %vm941_vm5 = vcmp.ge.f32.partialorder %v933_v11, 0.0  ;;  %v949_v13 = vmul.f32 0.2, %v933_v11  ;;  %v899_v14 = vpop.f32.mrb[8].mxu1 }
 0x23b   : > { %v956_v16 = vsel %vm940_vm4, %v932_v8, %v948_v12  ;;  %v934_v17 = vadd.f32 %v923_v0, %v899_v14  ;;  %v901_v18 = vpop.f32.mrb[9].mxu1  ;;  %v2675_v8 = vld [vmem:[#allocation5 + $0x2e0] ss:$24 sps:$4 sm:$0xff]  }
 0x23c   : > { %v3054_v19 = vpack.c.bf16 %v956_v16, %v954_v15  ;;  %v935_v20 = vadd.f32 %v927_v1, %v901_v18  ;;  %v957_v22 = vsel %vm941_vm5, %v933_v11, %v949_v13 }
 0x23d   : > { %v963_v23 = vpack.c.bf16 %v957_v22, %v955_v21  ;;  %v950_v28 = vmul.f32 0.2, %v934_v17  ;;  %vm942_vm6 = vcmp.ge.f32.partialorder %v934_v17, 0.0 }
 0x23e   : > { %v905_v25 = vpop.f32.mrb[10].mxu1  ;;  %v951_v31 = vmul.f32 0.2, %v935_v20  ;;  %vm943_vm7 = vcmp.ge.f32.partialorder %v935_v20, 0.0 }
 0x23f   : > { %v936_v29 = vadd.f32 %v923_v0, %v905_v25  ;;  %v907_v30 = vpop.f32.mrb[11].mxu1  ;;  %1574 = vmatprep.mubr.bf16.mxu0 %v963_v23  ;;  %1627 = vmatprep.mubr.bf16.mxu1 %v963_v23  ;;  %v958_v37 = vsel %vm942_vm6, %v934_v17, %v950_v28  ;;  %v2663_v0 = vld [vmem:[#allocation5 + $0x220] ss:$24 sps:$4 sm:$0xff]  }
 0x240   : > { %v937_v32 = vadd.f32 %v927_v1, %v907_v30  ;;  %1575 = vmatmul.mubr.bf16.vlgmr.msra.gmra.mrb[8].mxu0 %v3054_v19  ;;  %1628 = vmatmul.mubr.bf16.vlgmr.msra.gmra.mrb[12].mxu1 %v3054_v19  ;;  %v959_v39 = vsel %vm943_vm7, %v935_v20, %v951_v31  ;;  %v2668_v1 = vld [vmem:[#allocation5 + $0x254] ss:$24 sps:$4 sm:$0xff]  }
 0x241   : > { %vm944_vm8 = vcmp.ge.f32.partialorder %v936_v29, 0.0  ;;  %v952_v33 = vmul.f32 0.2, %v936_v29  ;;  %1649 = vmatpush1.bf16.msra.mxu0 %v2630_v24 }
 0x242   : > { %vm945_vm9 = vcmp.ge.f32.partialorder %v937_v32, 0.0  ;;  %v953_v35 = vmul.f32 0.2, %v937_v32  ;;  %1650 = vmatprep.subr.bf16.mxu0 %v2635_v27 }
 0x243   : > { %v960_v38 = vsel %vm944_vm8, %v936_v29, %v952_v33 }
 0x244   : > { %v961_v40 = vsel %vm945_vm9, %v937_v32, %v953_v35  ;;  %v3058_v41 = vpack.c.bf16 %v960_v38, %v958_v37  ;;  %v2332_v35 = vld [vmem:[%s3200_s4 + $0x20] sm:$0xff]  ;;  %v2335_v37 = vld [vmem:[%s3200_s4 + $0x38] sm:$0xff] }
 0x245   : > { %1651 = vmatpush1.bf16.msra.mxu0 %v2633_v34  ;;  %v965_v42 = vpack.c.bf16 %v961_v40, %v959_v39  ;;  %v2333_v34 = vld [vmem:[%s3200_s4 + $0x28] sm:$0xff]  ;;  %v1701_v38 = vld [vmem:[%s3200_s4] sm:$0xff]  ;;  %v1703_v40 = vld [vmem:[%s3200_s4 + $0x10] sm:$0xff] }
 0x246   : > { %1652 = vmatprep.subr.bf16.mxu0 %v2638_v36  ;;  %v2334_v36 = vld [vmem:[%s3200_s4 + $0x30] sm:$0xff]  ;;  %v1702_v39 = vld [vmem:[%s3200_s4 + $0x8] sm:$0xff] }
 0x247   : > { %1584 = vmatprep.mubr.bf16.mxu0 %v965_v42  ;;  %1637 = vmatprep.mubr.bf16.mxu1 %v965_v42 }
 0x248   : > { %1585 = vmatmul.mubr.bf16.gmra.mrb[12].mxu0 %v3058_v41  ;;  %1638 = vmatmul.mubr.bf16.gmra.mrb[16].mxu1 %v3058_v41 }
 0x249   : > { %1653 = vmatpush1.bf16.msra.mxu0 %v2636_v43  ;;  %1680 = vmatprep.mubr.bf16.mxu0 %v963_v23 }
 0x24a   : > { %1654 = vmatprep.subr.bf16.mxu0 %v2641_v44  ;;  %1793 = vmatprep.mubr.f32.mxu1 %v2811_v26 }
 0x24d   : > { %1655 = vmatpush1.bf16.msra.mxu0 %v2639_v45 }
 0x24e   : > { %1656 = vmatprep.subr.bf16.mxu0 %v2644_v46 }
 0x251   : > { %1657 = vmatpush1.bf16.msra.mxu0 %v2642_v47 }
 0x252   : > { %1658 = vmatprep.subr.bf16.mxu0 %v2647_v48 }
 0x255   : > { %1659 = vmatpush1.bf16.msra.mxu0 %v2645_v49 }
 0x256   : > { %1660 = vmatprep.subr.bf16.mxu0 %v2650_v50 }
 0x259   : > { %1661 = vmatpush1.bf16.msra.mxu0 %v2648_v51 }
 0x25a   : > { %1662 = vmatprep.subr.bf16.mxu0 %v2653_v52 }
 0x25d   : > { %1663 = vmatpush1.bf16.msra.mxu0 %v2651_v53 }
 0x25e   : > { %1664 = vmatprep.subr.bf16.mxu0 %v2656_v54  ;;  %v2344_v54 = vld [vmem:[%s3200_s4 + $0x40] sm:$0xff] }
 0x261   : > { %1665 = vmatpush1.bf16.msra.mxu0 %v2654_v55  ;;  %v2345_v55 = vld [vmem:[%s3200_s4 + $0x48] sm:$0xff] }
 0x262   : > { %1666 = vmatprep.subr.bf16.mxu0 %v2659_v56  ;;  %v2346_v56 = vld [vmem:[%s3200_s4 + $0x50] sm:$0xff] }
 0x265   : > { %1667 = vmatpush1.bf16.msra.mxu0 %v2657_v57  ;;  %v2347_v57 = vld [vmem:[%s3200_s4 + $0x58] sm:$0xff] }
 0x266   : > { %1668 = vmatprep.subr.bf16.mxu0 %v2662_v58 }
 0x269   : > { %1669 = vmatpush1.bf16.msra.mxu0 %v2660_v59 }
 0x26a   : > { %1670 = vmatprep.subr.bf16.mxu0 %v2665_v62  ;;  %v2027_v62 = vld [vmem:[%s3202_s6] sm:$0x3] }
 0x26d   : > { %1671 = vmatpush1.bf16.msra.mxu0 %v2663_v0  ;;  %v2032_v0 = vrot.slane %v2027_v62, %v922_v61 }
 0x26e   : > { %1672 = vmatprep.subr.bf16.mxu0 %v2668_v1 }
 0x271   : > { %1673 = vmatpush1.bf16.msra.mxu0 %v2666_v2 }
 0x272   : > { %1674 = vmatprep.subr.bf16.mxu0 %v2671_v3 }
 0x275   : > { %1675 = vmatpush1.bf16.msra.mxu0 %v2669_v4 }
 0x276   : > { %1676 = vmatprep.subr.bf16.mxu0 %v2674_v5 }
 0x279   : > { %1677 = vmatpush1.bf16.msra.mxu0 %v2672_v6 }
 0x27a   : > { %1678 = vmatprep.subr.bf16.mxu0 %v2677_v7 }
 0x27d   : > { %1679 = vmatpush1.bf16.msra.mxu0 %v2675_v8 }
 0x280   : > { %1681 = vmatmul.mubr.bf16.vlgmr.msra.gmra.mrb[16].mxu0 %v3054_v19 }
 0x281   : > { %1690 = vmatprep.mubr.bf16.mxu0 %v965_v42 }
 0x288   : > { %1691 = vmatmul.mubr.bf16.gmra.mrb[20].mxu0 %v3058_v41  ;;  %v1704_v41 = vld [vmem:[%s3200_s4 + $0x18] sm:$0xff] }
 0x289   : > { %1787 = vmatprep.mubr.f32.mxu0 %v2811_v26 }
 0x313   : > { %v1576_v9 = vpop.f32.mrb[8].mxu0  ;;  %v1629_v10 = vpop.f32.mrb[12].mxu1 }
 0x314   : > { %v1578_v11 = vpop.f32.mrb[9].mxu0  ;;  %v1631_v12 = vpop.f32.mrb[13].mxu1 }
 0x315   : > { %v1580_v13 = vpop.f32.mrb[10].mxu0  ;;  %v1633_v14 = vpop.f32.mrb[14].mxu1 }
 0x316   : > { %v2381_v15 = vpack.c.bf16 %v1580_v13, %v1576_v9  ;;  %v2373_v16 = vpack.c.bf16 %v1633_v14, %v1629_v10  ;;  %v1582_v17 = vpop.f32.mrb[11].mxu0  ;;  %v1635_v18 = vpop.f32.mrb[15].mxu1 }
 0x317   : > { %v2379_v20 = vpack.c.bf16 %v1582_v17, %v1578_v11  ;;  %v2371_v21 = vpack.c.bf16 %v1635_v18, %v1631_v12 }
 0x319   : > { %2372 = vmatprep.subr.bf16.mxu0 %v2371_v21  ;;  %2395 = vmatprep.subr.bf16.mxu1 %v2371_v21 }
 0x31a   : > { %2374 = vmatpush1.bf16.msra.mxu0 %v2373_v16  ;;  %2397 = vmatpush1.bf16.msra.mxu1 %v2373_v16 }
 0x31b   : > { %v1586_v19 = vpop.f32.mrb[12].mxu0  ;;  %v1639_v22 = vpop.f32.mrb[16].mxu1 }
 0x31c   : > { %v1588_v23 = vpop.f32.mrb[13].mxu0  ;;  %v1641_v24 = vpop.f32.mrb[17].mxu1 }
 0x31d   : > { %v1590_v25 = vpop.f32.mrb[14].mxu0  ;;  %v1643_v27 = vpop.f32.mrb[18].mxu1 }
 0x31e   : > { %v2385_v28 = vpack.c.bf16 %v1590_v25, %v1586_v19  ;;  %v2377_v29 = vpack.c.bf16 %v1643_v27, %v1639_v22  ;;  %v1592_v30 = vpop.f32.mrb[15].mxu0  ;;  %v1645_v31 = vpop.f32.mrb[19].mxu1 }
 0x31f   : > { %v2383_v32 = vpack.c.bf16 %v1592_v30, %v1588_v23  ;;  %v2375_v33 = vpack.c.bf16 %v1645_v31, %v1641_v24 }
 0x321   : > { %2376 = vmatprep.subr.bf16.mxu0 %v2375_v33  ;;  %2396 = vmatprep.subr.bf16.mxu1 %v2375_v33 }
 0x322   : > { %2378 = vmatpush1.bf16.msra.mxu0 %v2377_v29  ;;  %2398 = vmatpush1.bf16.msra.mxu1 %v2377_v29 }
 0x323   : > { %2380 = vmatprep.subr.bf16.mxu1 %v2379_v20 }
 0x325   : > { %2337 = vmatmul.mubr.msk.f32.vlgmr.msra.gmra.mrb[20].mxu1 %vm1710_vm10, %v2333_v34  ;;  %2336 = vmatmul.mubr.msk.f32.vlgmr.msra.gmra.mrb[24].mxu0 %vm1710_vm10, %v2332_v35 }
 0x326   : > { %2382 = vmatpush1.bf16.msra.mxu1 %v2381_v15  ;;  %1799 = vmatprep.mubr.f32.mxu1 %v2811_v26 }
 0x327   : > { %2384 = vmatprep.subr.bf16.mxu1 %v2383_v32 }
 0x329   : > { %2338 = vmatmul.mubr.msk.f32.gmra.mrb[22].mxu1 %vm1710_vm10, %v2334_v36 }
 0x32a   : > { %2386 = vmatpush1.bf16.msra.mxu1 %v2385_v28  ;;  %1805 = vmatprep.mubr.f32.mxu1 %v2811_v26 }
 0x32d   : > { %2339 = vmatmul.mubr.msk.f32.gmra.mrb[24].mxu1 %vm1710_vm10, %v2335_v37 }
 0x32e   : > { %1888 = vmatprep.mubr.f32.mxu1 %v2811_v26 }
 0x331   : > { %2340 = vmatmul.mubr.msk.f32.vlgmr.msra.gmra.mrb[26].mxu1 %vm1710_vm10, %v1701_v38 }
 0x332   : > { %1894 = vmatprep.mubr.f32.mxu1 %v2811_v26 }
 0x335   : > { %2341 = vmatmul.mubr.msk.f32.gmra.mrb[20].mxu1 %vm1710_vm10, %v1702_v39 }
 0x336   : > { %1900 = vmatprep.mubr.f32.mxu1 %v2811_v26 }
 0x339   : > { %2342 = vmatmul.mubr.msk.f32.gmra.mrb[22].mxu1 %vm1710_vm10, %v1703_v40 }
 0x33a   : > { %1906 = vmatprep.mubr.f32.mxu1 %v2811_v26 }
 0x33d   : > { %2343 = vmatmul.mubr.msk.f32.gmra.mrb[24].mxu1 %vm1710_vm10, %v1704_v41 }
 0x33e   : > { %1994 = vmatprep.mubr.f32.mxu1 %v2811_v26 }
 0x353   : > { %v1682_v42 = vpop.f32.mrb[16].mxu0 }
 0x354   : > { %v1684_v43 = vpop.f32.mrb[17].mxu0 }
 0x355   : > { %v1686_v44 = vpop.f32.mrb[18].mxu0 }
 0x356   : > { %v2389_v45 = vpack.c.bf16 %v1686_v44, %v1682_v42  ;;  %v1688_v46 = vpop.f32.mrb[19].mxu0 }
 0x357   : > { %v2387_v47 = vpack.c.bf16 %v1688_v46, %v1684_v43 }
 0x359   : > { %2388 = vmatprep.subr.bf16.mxu1 %v2387_v47 }
 0x35a   : > { %2390 = vmatpush1.bf16.msra.mxu1 %v2389_v45 }
 0x35b   : > { %v1692_v48 = vpop.f32.mrb[20].mxu0 }
 0x35c   : > { %v1694_v49 = vpop.f32.mrb[21].mxu0 }
 0x35d   : > { %v1696_v50 = vpop.f32.mrb[22].mxu0 }
 0x35e   : > { %v2393_v51 = vpack.c.bf16 %v1696_v50, %v1692_v48  ;;  %v1698_v52 = vpop.f32.mrb[23].mxu0 }
 0x35f   : > { %v2391_v53 = vpack.c.bf16 %v1698_v52, %v1694_v49 }
 0x361   : > { %2392 = vmatprep.subr.bf16.mxu1 %v2391_v53 }
 0x362   : > { %2394 = vmatpush1.bf16.msra.mxu1 %v2393_v51 }
 0x365   : > { %2348 = vmatmul.mubr.msk.f32.vlgmr.msra.gmra.mrb[26].mxu1 %vm1710_vm10, %v2344_v54 }
 0x366   : > { %2000 = vmatprep.mubr.f32.mxu1 %v2811_v26 }
 0x369   : > { %2349 = vmatmul.mubr.msk.f32.gmra.mrb[20].mxu1 %vm1710_vm10, %v2345_v55 }
 0x36a   : > { %2006 = vmatprep.mubr.f32.mxu1 %v2811_v26 }
 0x36d   : > { %2350 = vmatmul.mubr.msk.f32.gmra.mrb[22].mxu1 %vm1710_vm10, %v2346_v56 }
 0x36e   : > { %2012 = vmatprep.mubr.f32.mxu1 %v2811_v26  ;;  %v2036_v26 = vrot.slane %v2027_v62, %v926_v63 }
 0x371   : > { %2351 = vmatmul.mubr.msk.f32.gmra.mrb[24].mxu1 %vm1710_vm10, %v2347_v57 }
 0x3f8   : > { %v1789_v58 = vpop.f32.mrb[24].mxu0 }
 0x3f9   : > { %v1791_v59 = vpop.f32.mrb[25].mxu0 }
 0x438   : > { %v1996_v1 = vpop.f32.mrb[26].mxu1 }
 0x439   : > { %v2399_v2 = vadd.f32 %v1996_v1, %v1789_v58  ;;  %v1998_v3 = vpop.f32.mrb[27].mxu1 }
 0x43a   : > { %v2400_v4 = vadd.f32 %v1998_v3, %v1791_v59 }
 0x43b   : > { %v2039_v5 = vadd.f32 %v2399_v2, %v2032_v0 }
 0x43c   : > { %v2040_v6 = vadd.f32 %v2400_v4, %v2036_v26  ;;  %v2002_v7 = vpop.f32.mrb[20].mxu1 }
 0x43d   : > { %vm2047_vm11 = vcmp.ge.f32.partialorder %v2039_v5, 0.0  ;;  %v2055_v8 = vmul.f32 0.2, %v2039_v5  ;;  %v2041_v9 = vadd.f32 %v2032_v0, %v2002_v7  ;;  %v2004_v10 = vpop.f32.mrb[21].mxu1 }
 0x43e   : > { %vm2048_vm12 = vcmp.ge.f32.partialorder %v2040_v6, 0.0  ;;  %v2056_v11 = vmul.f32 0.2, %v2040_v6  ;;  %v2042_v12 = vadd.f32 %v2036_v26, %v2004_v10 }
 0x43f   : > { %v2063_v61 = vsel %vm2047_vm11, %v2039_v5, %v2055_v8  ;;  %vm2049_vm13 = vcmp.ge.f32.partialorder %v2041_v9, 0.0  ;;  %v2057_v13 = vmul.f32 0.2, %v2041_v9 }
 0x440   : > { %2071 = vst [vmem:[%s3134_s19] sm:$0xff] %v2063_v61  ;;  %v2064_v60 = vsel %vm2048_vm12, %v2040_v6, %v2056_v11  ;;  %vm2050_vm14 = vcmp.ge.f32.partialorder %v2042_v12, 0.0  ;;  %v2058_v63 = vmul.f32 0.2, %v2042_v12  ;;  %v2008_v14 = vpop.f32.mrb[22].mxu1 }
 0x441   : > { %2072 = vst [vmem:[%s3134_s19 + $0x8] sm:$0xff] %v2064_v60  ;;  %v2065_v15 = vsel %vm2049_vm13, %v2041_v9, %v2057_v13  ;;  %v2043_v16 = vadd.f32 %v2032_v0, %v2008_v14  ;;  %v2010_v17 = vpop.f32.mrb[23].mxu1 }
 0x442   : > { %2073 = vst [vmem:[%s3134_s19 + $0x10] sm:$0xff] %v2065_v15  ;;  %v2066_v18 = vsel %vm2050_vm14, %v2042_v12, %v2058_v63  ;;  %v2044_v20 = vadd.f32 %v2036_v26, %v2010_v17 }
 0x443   : > { %2074 = vst [vmem:[%s3134_s19 + $0x18] sm:$0xff] %v2066_v18  ;;  %vm2051_vm15 = vcmp.ge.f32.partialorder %v2043_v16, 0.0  ;;  %v2059_v21 = vmul.f32 0.2, %v2043_v16 }
 0x444   : > { %vm2052_vm0 = vcmp.ge.f32.partialorder %v2044_v20, 0.0  ;;  %v2060_v19 = vmul.f32 0.2, %v2044_v20  ;;  %v2014_v22 = vpop.f32.mrb[24].mxu1 }
 0x445   : > { %v2067_v23 = vsel %vm2051_vm15, %v2043_v16, %v2059_v21  ;;  %v2045_v24 = vadd.f32 %v2032_v0, %v2014_v22  ;;  %v2016_v25 = vpop.f32.mrb[25].mxu1 }
 0x446   : > { %2075 = vst [vmem:[%s3134_s19 + $0x20] sm:$0xff] %v2067_v23  ;;  %v2068_v27 = vsel %vm2052_vm0, %v2044_v20, %v2060_v19  ;;  %v2046_v28 = vadd.f32 %v2036_v26, %v2016_v25 }
 0x447   : > { %2076 = vst [vmem:[%s3134_s19 + $0x28] sm:$0xff] %v2068_v27  ;;  %vm2053_vm1 = vcmp.ge.f32.partialorder %v2045_v24, 0.0  ;;  %v2061_v29 = vmul.f32 0.2, %v2045_v24 }
 0x448   : > { %vm2054_vm2 = vcmp.ge.f32.partialorder %v2046_v28, 0.0  ;;  %v2062_v30 = vmul.f32 0.2, %v2046_v28 }
 0x449   : > { %v2069_v31 = vsel %vm2053_vm1, %v2045_v24, %v2061_v29 }
 0x44a   : > { %2077 = vst [vmem:[%s3134_s19 + $0x30] sm:$0xff] %v2069_v31  ;;  %v2070_v32 = vsel %vm2054_vm2, %v2046_v28, %v2062_v30 }
 0x44b   : > { %2078 = vst [vmem:[%s3134_s19 + $0x38] sm:$0xff] %v2070_v32 }
 0x44c   : > { %2747 = shalt.err (!%p2744_p11)
}
 0x44d   : > { %s2748_s29 = scalar_lea.hbm %s3147_s17, 1024  ;;  %s2752_s15 = scalar_lea.hbm %s3203_s7, 2048 }
 0x44e   : > { %p2749_p13 = scmp.ne.s32.totalorder %s3147_s17, %s2748_s29  ;;  %p2753_p6 = scmp.lt.u32.totalorder %s3147_s17, %s3203_s7 }
 0x44f   : > { %p2754_p9 = scmp.lt.u32.totalorder %s2752_s15, %s2748_s29  ;;  %p2756_p10 = scmp.lt.u32.totalorder %s2748_s29, %s3147_s17 }
 0x450   : > { %p2750_p5 = pnand %p2749_p13, %p3217_p1 }
 0x451   : > { %p2755_p12 = por %p2754_p9, %p2753_p6 }
 0x452   : > { %p2751_p0 = pneg %p2750_p5 }
 0x453   : > { %p2757_p2 = por %p2756_p10, %p2755_p12 }
 0x455   : > { %p2758_p3 = pnand %p2757_p2, %p2751_p0 }
 0x457   : > { %2761 = shalt.err (!%p2758_p3)
}
 0x458   : > { %s2813_s13 = smov 256   ;;  %s2814_s18 = smov 16  }
 0x459   : > { %2439 = dma.vmem_to_hbm [thread:$0]  (%p3217_p1), %s3149_s16, 1024, %s3147_s17, %s3155_s28, %s2813_s13, %s2813_s13, %s2814_s18  }
 0x45a PF: > { %p2456_p4 = scmp.ge.s32.totalorder %s2804_s27, 2  ;;  %s2108_s14 = sand.u32 1, %s2792_s24  }
 0x45b   : > { %p3218_p7 = scmp.ne.s32.totalorder %s3209_s12, 0  ;;  %s2109_s20 = scalar_lea.sflag [#allocation4], %s2108_s14 }
 0x45d   : > { %p2449_p8 = pnand %p2456_p4, %p3218_p7 }
 0x45f   : > { %2787 = dma.done.wait (!%p2449_p8), %s2109_s20, 1024  }
 0x460   : > { %2789 = vsyncadd (!%p2449_p8), %s2109_s20, 4294966272  ;;  %s3219_s21 = sld [smem:[#allocation11_spill]]  ;;  %p19_p11 = scmp.ge.s32.totalorder %s2880_s30, 4  }
 0x461   : > { %s3220_s24 = smov %s2796_s25  ;;  %s3221_s25 = smov %s2800_s26 }
 0x462   : > { %s3223_s27 = smov %s2880_s30  ;;  %21 = sbr.rel (!%p19_p11) target bundleno = 5 (0x5), region = 96 }
 0x466   : > { %s3222_s26 = smov %s3219_s21 }
 0x469   :  { %2114 = vsyncpa [#allocation3], 1 }
 0x46a   :  { %2116 = vsyncpa [#allocation3 + $0x1], 1 }
 0x46b   :  { %2117 = vsyncpa [#allocation6], 1 }
 0x46c   :  { %2118 = vsyncpa [#allocation4], 1 }
 0x46d   :  { %2120 = vsyncpa [#allocation4 + $0x1], 1 }

</bundles_post_ra>
